<compile_context>
chip_gen: v7x
topology: tpu7x:2x2x1
jax: 0.10.0
libtpu: 0.0.40
codegen_flags: <defaults>
</compile_context>

<pallas_src>
from functools import partial

import jax
import jax.numpy as jnp
from jax import lax
from jax.experimental import pallas as pl
from jax.experimental.pallas import tpu as pltpu

BATCH_PAD = 8     # sublane-aligned batch tile
LANES = 128       # lane-dense output width


def remi_lstm_kernel(tok_ref, emb_ref, wih_ref, b_ref, whh_ref, alpha_ref,
                     beta_ref, w1_ref, b1_ref, w2_ref, b2_ref, out_ref,
                     xproj_ref):
    """tok_ref:   (S*8, 1) int32 time-major tokens, batch padded to 8.
    emb_ref:   (num_tokens, H) f32 embedding table.
    wih_ref:   (H, 4H) f32 fused input weight, gate order i|f|g|o,
               i/f/o columns pre-scaled by 0.5.
    b_ref:     (1, 4H) f32 fused bias (b_ih + b_hh), same pre-scaling.
    whh_ref:   (H, 4H) bf16 fused recurrent weight, same pre-scaling.
    alpha/beta_ref: (1, 4H) f32 per-lane affine turning tanh into sigmoid on
               the i/f/o lanes (identity on the g lanes).
    w1/b1:     (H, H) / (1, H) f32 head layer 1.
    w2/b2:     (H, 128) / (1, 128) f32 head layer 2, zero-padded lane-dense.
    out_ref:   (8, 128) f32 padded logits.
    xproj_ref: (S*8, 4H) f32 scratch: hoisted per-step input projection."""
    bp = out_ref.shape[0]
    hidden = whh_ref.shape[0]
    num_tokens = emb_ref.shape[0]
    seq_len = xproj_ref.shape[0] // bp

    # ---- Fused embedding lookup + input projection (hoisted, f32) --------
    # Project the whole (small) REMI vocab once, then pick per-(t, b) rows
    # with a one-hot MXU matmul: replaces the eager gather/transpose/cast
    # that previously dominated wall clock, and needs no dynamic indexing.
    embp = (jnp.dot(emb_ref[...], wih_ref[...],
                    preferred_element_type=jnp.float32)
            + b_ref[...])                                        # (NT, 4H)
    onehot = (tok_ref[...] ==
              lax.broadcasted_iota(jnp.int32, (seq_len * bp, num_tokens), 1)
              ).astype(jnp.float32)                              # (S*8, NT)
    xproj_ref[...] = jnp.dot(onehot, embp,
                             preferred_element_type=jnp.float32)  # (S*8, 4H)

    whh = whh_ref[...]            # (H, 4H) bf16, resident across the loop
    alpha = alpha_ref[...]        # hoisted lane vectors (no per-iter bcast)
    beta = beta_ref[...]

    # ---- LSTM recurrence: h/c live in registers, static unroll (toy S) ---
    h = jnp.zeros((bp, hidden), jnp.bfloat16)   # bf16 carry = MXU operand
    c = jnp.zeros((bp, hidden), jnp.float32)
    h32 = jnp.zeros((bp, hidden), jnp.float32)
    for t in range(seq_len):
        # tile-aligned static slice (bp == 8 sublanes) -> free view
        x_t = xproj_ref[t * bp:(t + 1) * bp, :]
        pre = x_t + jnp.dot(h, whh, preferred_element_type=jnp.float32)
        # single EUP push for all four gates; affine recovers sigmoid on
        # the (pre-scaled) i/f/o lanes and is identity on the g lanes.
        gates = jnp.tanh(pre) * alpha + beta
        # TODO(synk): if the bundle dump shows these 32-lane carve-outs as
        # VPU mask/compact work, switch to pltpu.roll-based gate alignment.
        i_g = gates[:, 0 * hidden:1 * hidden]
        f_g = gates[:, 1 * hidden:2 * hidden]
        g_g = gates[:, 2 * hidden:3 * hidden]
        o_g = gates[:, 3 * hidden:4 * hidden]
        c = f_g * c + i_g * g_g                  # f32 state math (v5e-safe)
        h32 = o_g * jnp.tanh(c)                  # second (last) EUP push
        h = h32.astype(jnp.bfloat16)

    # ---- fc head on last-timestep hidden (runs once, f32) ----------------
    h1 = jnp.maximum(
        jnp.dot(h32, w1_ref[...], preferred_element_type=jnp.float32)
        + b1_ref[...], 0.0)
    out_ref[...] = (jnp.dot(h1, w2_ref[...],
                            preferred_element_type=jnp.float32)
                    + b2_ref[...])               # lane-dense (8, 128) store


def prepare_params(p):
    """One-time parameter prep (outside the hot path):
    * pre-scale i/f/o gate columns by 0.5 (sigmoid(z) = 0.5*tanh(0.5 z)+0.5)
    * recurrent weight to bf16 (MXU-native operand on the critical path)
    * pad the final head to 128 lane-dense output columns."""
    hidden = p["emb"].shape[1]
    num_classes = p["w2_T"].shape[1]
    col_scale = jnp.concatenate([
        jnp.full((2 * hidden,), 0.5, jnp.float32),   # i, f
        jnp.ones((hidden,), jnp.float32),            # g
        jnp.full((hidden,), 0.5, jnp.float32),       # o
    ]).reshape(1, -1)
    beta = jnp.concatenate([
        jnp.full((2 * hidden,), 0.5, jnp.float32),
        jnp.zeros((hidden,), jnp.float32),
        jnp.full((hidden,), 0.5, jnp.float32),
    ]).reshape(1, -1)
    w2_pad = jnp.zeros((hidden, LANES), jnp.float32).at[:, :num_classes].set(
        p["w2_T"].astype(jnp.float32))
    b2_pad = jnp.zeros((1, LANES), jnp.float32).at[:, :num_classes].set(
        p["b2"].astype(jnp.float32))
    return {
        "emb": p["emb"].astype(jnp.float32),
        "wih_s": (p["wih_T"] * col_scale).astype(jnp.float32),
        "b_s": (p["b"] * col_scale).astype(jnp.float32),
        "whh_s": (p["whh_T"] * col_scale).astype(jnp.bfloat16),
        "alpha": col_scale,
        "beta": beta,
        "w1": p["w1_T"].astype(jnp.float32),
        "b1": p["b1"].astype(jnp.float32),
        "w2_pad": w2_pad,
        "b2_pad": b2_pad,
    }


@partial(jax.jit, static_argnames=("num_classes",))
def remi_classifier_forward(input_tokens, q, *, num_classes):
    """Fused forward: all model math (embedding lookup included) runs inside
    one Pallas kernel; only a trivial int token re-layout stays in XLA."""
    batch, seq = input_tokens.shape
    hidden = q["emb"].shape[1]

    # time-major (permute(1,0,2) equivalent), batch padded to 8 sublanes,
    # flattened to (S*8, 1) for the in-kernel one-hot embedding lookup.
    tok_sb = jnp.transpose(input_tokens.astype(jnp.int32), (1, 0))   # (S, B)
    tok_pad = jnp.zeros((seq, BATCH_PAD), jnp.int32).at[:, :batch].set(tok_sb)
    tok_flat = tok_pad.reshape(seq * BATCH_PAD, 1)

    vmem = pl.BlockSpec(memory_space=pltpu.MemorySpace.VMEM)
    out_pad = pl.pallas_call(
        remi_lstm_kernel,
        out_shape=jax.ShapeDtypeStruct((BATCH_PAD, LANES), jnp.float32),
        in_specs=[vmem] * 11,
        out_specs=vmem,
        scratch_shapes=[
            pltpu.VMEM((seq * BATCH_PAD, 4 * hidden), jnp.float32)],
    )(tok_flat, q["emb"], q["wih_s"], q["b_s"], q["whh_s"], q["alpha"],
      q["beta"], q["w1"], q["b1"], q["w2_pad"], q["b2_pad"])
    return out_pad[:batch, :num_classes]


def reference_forward(input_tokens, p):
    """Pure-JAX f32 reference mirroring PyTorch semantics."""
    hp = lax.Precision.HIGHEST
    emb = p["emb"][input_tokens]
    x = jnp.transpose(emb, (1, 0, 2)).astype(jnp.float32)      # (S, B, H)
    seq_len, batch, hidden = x.shape
    h = jnp.zeros((batch, hidden), jnp.float32)
    c = jnp.zeros((batch, hidden), jnp.float32)
    for t in range(seq_len):
        pre = (jnp.dot(x[t], p["wih_T"], precision=hp)
               + jnp.dot(h, p["whh_T"], precision=hp) + p["b"])
        i_g = jax.nn.sigmoid(pre[:, 0 * hidden:1 * hidden])
        f_g = jax.nn.sigmoid(pre[:, 1 * hidden:2 * hidden])
        g_g = jnp.tanh(pre[:, 2 * hidden:3 * hidden])
        o_g = jax.nn.sigmoid(pre[:, 3 * hidden:4 * hidden])
        c = f_g * c + i_g * g_g
        h = o_g * jnp.tanh(c)
    h1 = jnp.maximum(jnp.dot(h, p["w1_T"], precision=hp) + p["b1"], 0.0)
    return jnp.dot(h1, p["w2_T"], precision=hp) + p["b2"]


if __name__ == "__main__":
    num_tokens, hidden, num_classes = 64, 32, 4
    batch, seq = 2, 8

    key = jax.random.PRNGKey(0)
    ks = jax.random.split(key, 9)
    s = float(1.0 / (hidden ** 0.5))

    # Deterministic synthetic parameters.  LSTM weights are stored fused and
    # pre-transposed: (H, 4H) with gate order i|f|g|o along the 4H axis
    # (equivalent to PyTorch weight_ih_l0.T / weight_hh_l0.T concatenation),
    # bias = b_ih + b_hh.
    params = {
        "emb":   jax.random.normal(ks[0], (num_tokens, hidden), jnp.float32),
        "wih_T": jax.random.uniform(ks[1], (hidden, 4 * hidden), jnp.float32, -s, s),
        "whh_T": jax.random.uniform(ks[2], (hidden, 4 * hidden), jnp.float32, -s, s),
        "b":     jax.random.uniform(ks[3], (1, 4 * hidden), jnp.float32, -s, s),
        "w1_T":  jax.random.uniform(ks[4], (hidden, hidden), jnp.float32, -s, s),
        "b1":    jax.random.uniform(ks[5], (1, hidden), jnp.float32, -s, s),
        "w2_T":  jax.random.uniform(ks[6], (hidden, num_classes), jnp.float32, -s, s),
        "b2":    jax.random.uniform(ks[7], (1, num_classes), jnp.float32, -s, s),
    }
    tokens = jax.random.randint(ks[8], (batch, seq), 0, num_tokens)

    q = prepare_params(params)
    out = remi_classifier_forward(tokens, q, num_classes=num_classes)
    jax.block_until_ready(out)

    ref = reference_forward(tokens, params)
    assert out.shape == (batch, num_classes)
    # bf16 recurrent-matmul operands vs Precision.HIGHEST f32 reference.
    assert jnp.allclose(out, ref, atol=2e-2, rtol=2e-2), \
        f"max diff {jnp.max(jnp.abs(out - ref))}"
    print("KERNEL_OK")
</pallas_src>

<mosaic_0001>
module attributes {stable_mosaic.version = 11 : i64} {
  func.func @remi_lstm_kernel(%arg0: memref<64x1xi32, #tpu.memory_space<vmem>>, %arg1: memref<64x32xf32, #tpu.memory_space<vmem>>, %arg2: memref<32x128xf32, #tpu.memory_space<vmem>>, %arg3: memref<1x128xf32, #tpu.memory_space<vmem>>, %arg4: memref<32x128xbf16, #tpu.memory_space<vmem>>, %arg5: memref<1x128xf32, #tpu.memory_space<vmem>>, %arg6: memref<1x128xf32, #tpu.memory_space<vmem>>, %arg7: memref<32x32xf32, #tpu.memory_space<vmem>>, %arg8: memref<1x32xf32, #tpu.memory_space<vmem>>, %arg9: memref<32x128xf32, #tpu.memory_space<vmem>>, %arg10: memref<1x128xf32, #tpu.memory_space<vmem>>, %arg11: memref<8x128xf32, #tpu.memory_space<vmem>>, %arg12: memref<64x128xf32, #tpu.memory_space<vmem>>) attributes {dimension_semantics = [], scalar_prefetch = 0 : i64, scratch_operands = 1 : i64, tpu.core_type = #tpu.core_type<tc>} {
    %c0 = arith.constant 0 : index
    %c0_0 = arith.constant 0 : index
    %0 = vector.load %arg1[%c0, %c0_0] : memref<64x32xf32, #tpu.memory_space<vmem>>, vector<64x32xf32>
    %c0_1 = arith.constant 0 : index
    %c0_2 = arith.constant 0 : index
    %1 = vector.load %arg2[%c0_1, %c0_2] : memref<32x128xf32, #tpu.memory_space<vmem>>, vector<32x128xf32>
    %cst = arith.constant dense<0.000000e+00> : vector<64x128xf32>
    %2 = tpu.matmul %0, %1, %cst {dimension_numbers = #tpu.dot_dimension_numbers<[1], [0], [0], [1], [0, 0, 1, 1], [], []>} : vector<64x32xf32>, vector<32x128xf32>, vector<64x128xf32> -> vector<64x128xf32>
    %c0_3 = arith.constant 0 : index
    %c0_4 = arith.constant 0 : index
    %3 = vector.load %arg3[%c0_3, %c0_4] : memref<1x128xf32, #tpu.memory_space<vmem>>, vector<1x128xf32>
    %4 = vector.broadcast %3 : vector<1x128xf32> to vector<64x128xf32>
    %5 = arith.addf %2, %4 : vector<64x128xf32>
    %c0_5 = arith.constant 0 : index
    %c0_6 = arith.constant 0 : index
    %6 = vector.load %arg0[%c0_5, %c0_6] : memref<64x1xi32, #tpu.memory_space<vmem>>, vector<64x1xi32>
    %7 = tpu.iota {dimensions = array<i32: 1>} : vector<64x64xi32>
    %8 = vector.broadcast %6 : vector<64x1xi32> to vector<64x64xi32>
    %9 = arith.cmpi eq, %8, %7 : vector<64x64xi32>
    %10 = arith.extui %9 : vector<64x64xi1> to vector<64x64xi32>
    %11 = arith.sitofp %10 : vector<64x64xi32> to vector<64x64xf32>
    %cst_7 = arith.constant dense<0.000000e+00> : vector<64x128xf32>
    %12 = tpu.matmul %11, %5, %cst_7 {dimension_numbers = #tpu.dot_dimension_numbers<[1], [0], [0], [1], [0, 0, 1, 1], [], []>} : vector<64x64xf32>, vector<64x128xf32>, vector<64x128xf32> -> vector<64x128xf32>
    %c0_8 = arith.constant 0 : index
    %c0_9 = arith.constant 0 : index
    %13 = vector.load %arg12[%c0_8, %c0_9] : memref<64x128xf32, #tpu.memory_space<vmem>>, vector<64x128xf32>
    tpu.vector_store %arg12[%c0_8, %c0_9], %12 {strides = array<i32>} : memref<64x128xf32, #tpu.memory_space<vmem>>, vector<64x128xf32>,
    %c0_10 = arith.constant 0 : index
    %c0_11 = arith.constant 0 : index
    %14 = vector.load %arg4[%c0_10, %c0_11] : memref<32x128xbf16, #tpu.memory_space<vmem>>, vector<32x128xbf16>
    %c0_12 = arith.constant 0 : index
    %c0_13 = arith.constant 0 : index
    %15 = vector.load %arg5[%c0_12, %c0_13] : memref<1x128xf32, #tpu.memory_space<vmem>>, vector<1x128xf32>
    %c0_14 = arith.constant 0 : index
    %c0_15 = arith.constant 0 : index
    %16 = vector.load %arg6[%c0_14, %c0_15] : memref<1x128xf32, #tpu.memory_space<vmem>>, vector<1x128xf32>
    %cst_16 = arith.constant 0.000000e+00 : bf16
    %17 = vector.broadcast %cst_16 : bf16 to vector<8x32xbf16>
    %cst_17 = arith.constant 0.000000e+00 : f32
    %18 = vector.broadcast %cst_17 : f32 to vector<8x32xf32>
    %c0_18 = arith.constant 0 : index
    %c0_19 = arith.constant 0 : index
    %19 = vector.load %arg12[%c0_18, %c0_19] : memref<64x128xf32, #tpu.memory_space<vmem>>, vector<8x128xf32>
    %cst_20 = arith.constant dense<0.000000e+00> : vector<8x128xf32>
    %20 = tpu.matmul %17, %14, %cst_20 {dimension_numbers = #tpu.dot_dimension_numbers<[1], [0], [0], [1], [0, 0, 1, 1], [], []>} : vector<8x32xbf16>, vector<32x128xbf16>, vector<8x128xf32> -> vector<8x128xf32>
    %21 = arith.addf %19, %20 : vector<8x128xf32>
    %22 = math.tanh %21 : vector<8x128xf32>
    %23 = vector.broadcast %15 : vector<1x128xf32> to vector<8x128xf32>
    %24 = arith.mulf %22, %23 : vector<8x128xf32>
    %25 = vector.broadcast %16 : vector<1x128xf32> to vector<8x128xf32>
    %26 = arith.addf %24, %25 : vector<8x128xf32>
    %27 = vector.extract_strided_slice %26 {offsets = [0, 0], sizes = [8, 32], strides = [1, 1]} : vector<8x128xf32> to vector<8x32xf32>
    %28 = vector.extract_strided_slice %26 {offsets = [0, 32], sizes = [8, 32], strides = [1, 1]} : vector<8x128xf32> to vector<8x32xf32>
    %29 = vector.extract_strided_slice %26 {offsets = [0, 64], sizes = [8, 32], strides = [1, 1]} : vector<8x128xf32> to vector<8x32xf32>
    %30 = vector.extract_strided_slice %26 {offsets = [0, 96], sizes = [8, 32], strides = [1, 1]} : vector<8x128xf32> to vector<8x32xf32>
    %31 = arith.mulf %28, %18 : vector<8x32xf32>
    %32 = arith.mulf %27, %29 : vector<8x32xf32>
    %33 = arith.addf %31, %32 : vector<8x32xf32>
    %34 = math.tanh %33 : vector<8x32xf32>
    %35 = arith.mulf %30, %34 : vector<8x32xf32>
    %36 = arith.truncf %35 : vector<8x32xf32> to vector<8x32xbf16>
    %c8 = arith.constant 8 : index
    %c0_21 = arith.constant 0 : index
    %37 = vector.load %arg12[%c8, %c0_21] : memref<64x128xf32, #tpu.memory_space<vmem>>, vector<8x128xf32>
    %cst_22 = arith.constant dense<0.000000e+00> : vector<8x128xf32>
    %38 = tpu.matmul %36, %14, %cst_22 {dimension_numbers = #tpu.dot_dimension_numbers<[1], [0], [0], [1], [0, 0, 1, 1], [], []>} : vector<8x32xbf16>, vector<32x128xbf16>, vector<8x128xf32> -> vector<8x128xf32>
    %39 = arith.addf %37, %38 : vector<8x128xf32>
    %40 = math.tanh %39 : vector<8x128xf32>
    %41 = vector.broadcast %15 : vector<1x128xf32> to vector<8x128xf32>
    %42 = arith.mulf %40, %41 : vector<8x128xf32>
    %43 = vector.broadcast %16 : vector<1x128xf32> to vector<8x128xf32>
    %44 = arith.addf %42, %43 : vector<8x128xf32>
    %45 = vector.extract_strided_slice %44 {offsets = [0, 0], sizes = [8, 32], strides = [1, 1]} : vector<8x128xf32> to vector<8x32xf32>
    %46 = vector.extract_strided_slice %44 {offsets = [0, 32], sizes = [8, 32], strides = [1, 1]} : vector<8x128xf32> to vector<8x32xf32>
    %47 = vector.extract_strided_slice %44 {offsets = [0, 64], sizes = [8, 32], strides = [1, 1]} : vector<8x128xf32> to vector<8x32xf32>
    %48 = vector.extract_strided_slice %44 {offsets = [0, 96], sizes = [8, 32], strides = [1, 1]} : vector<8x128xf32> to vector<8x32xf32>
    %49 = arith.mulf %46, %33 : vector<8x32xf32>
    %50 = arith.mulf %45, %47 : vector<8x32xf32>
    %51 = arith.addf %49, %50 : vector<8x32xf32>
    %52 = math.tanh %51 : vector<8x32xf32>
    %53 = arith.mulf %48, %52 : vector<8x32xf32>
    %54 = arith.truncf %53 : vector<8x32xf32> to vector<8x32xbf16>
    %c16 = arith.constant 16 : index
    %c0_23 = arith.constant 0 : index
    %55 = vector.load %arg12[%c16, %c0_23] : memref<64x128xf32, #tpu.memory_space<vmem>>, vector<8x128xf32>
    %cst_24 = arith.constant dense<0.000000e+00> : vector<8x128xf32>
    %56 = tpu.matmul %54, %14, %cst_24 {dimension_numbers = #tpu.dot_dimension_numbers<[1], [0], [0], [1], [0, 0, 1, 1], [], []>} : vector<8x32xbf16>, vector<32x128xbf16>, vector<8x128xf32> -> vector<8x128xf32>
    %57 = arith.addf %55, %56 : vector<8x128xf32>
    %58 = math.tanh %57 : vector<8x128xf32>
    %59 = vector.broadcast %15 : vector<1x128xf32> to vector<8x128xf32>
    %60 = arith.mulf %58, %59 : vector<8x128xf32>
    %61 = vector.broadcast %16 : vector<1x128xf32> to vector<8x128xf32>
    %62 = arith.addf %60, %61 : vector<8x128xf32>
    %63 = vector.extract_strided_slice %62 {offsets = [0, 0], sizes = [8, 32], strides = [1, 1]} : vector<8x128xf32> to vector<8x32xf32>
    %64 = vector.extract_strided_slice %62 {offsets = [0, 32], sizes = [8, 32], strides = [1, 1]} : vector<8x128xf32> to vector<8x32xf32>
    %65 = vector.extract_strided_slice %62 {offsets = [0, 64], sizes = [8, 32], strides = [1, 1]} : vector<8x128xf32> to vector<8x32xf32>
    %66 = vector.extract_strided_slice %62 {offsets = [0, 96], sizes = [8, 32], strides = [1, 1]} : vector<8x128xf32> to vector<8x32xf32>
    %67 = arith.mulf %64, %51 : vector<8x32xf32>
    %68 = arith.mulf %63, %65 : vector<8x32xf32>
    %69 = arith.addf %67, %68 : vector<8x32xf32>
    %70 = math.tanh %69 : vector<8x32xf32>
    %71 = arith.mulf %66, %70 : vector<8x32xf32>
    %72 = arith.truncf %71 : vector<8x32xf32> to vector<8x32xbf16>
    %c24 = arith.constant 24 : index
    %c0_25 = arith.constant 0 : index
    %73 = vector.load %arg12[%c24, %c0_25] : memref<64x128xf32, #tpu.memory_space<vmem>>, vector<8x128xf32>
    %cst_26 = arith.constant dense<0.000000e+00> : vector<8x128xf32>
    %74 = tpu.matmul %72, %14, %cst_26 {dimension_numbers = #tpu.dot_dimension_numbers<[1], [0], [0], [1], [0, 0, 1, 1], [], []>} : vector<8x32xbf16>, vector<32x128xbf16>, vector<8x128xf32> -> vector<8x128xf32>
    %75 = arith.addf %73, %74 : vector<8x128xf32>
    %76 = math.tanh %75 : vector<8x128xf32>
    %77 = vector.broadcast %15 : vector<1x128xf32> to vector<8x128xf32>
    %78 = arith.mulf %76, %77 : vector<8x128xf32>
    %79 = vector.broadcast %16 : vector<1x128xf32> to vector<8x128xf32>
    %80 = arith.addf %78, %79 : vector<8x128xf32>
    %81 = vector.extract_strided_slice %80 {offsets = [0, 0], sizes = [8, 32], strides = [1, 1]} : vector<8x128xf32> to vector<8x32xf32>
    %82 = vector.extract_strided_slice %80 {offsets = [0, 32], sizes = [8, 32], strides = [1, 1]} : vector<8x128xf32> to vector<8x32xf32>
    %83 = vector.extract_strided_slice %80 {offsets = [0, 64], sizes = [8, 32], strides = [1, 1]} : vector<8x128xf32> to vector<8x32xf32>
    %84 = vector.extract_strided_slice %80 {offsets = [0, 96], sizes = [8, 32], strides = [1, 1]} : vector<8x128xf32> to vector<8x32xf32>
    %85 = arith.mulf %82, %69 : vector<8x32xf32>
    %86 = arith.mulf %81, %83 : vector<8x32xf32>
    %87 = arith.addf %85, %86 : vector<8x32xf32>
    %88 = math.tanh %87 : vector<8x32xf32>
    %89 = arith.mulf %84, %88 : vector<8x32xf32>
    %90 = arith.truncf %89 : vector<8x32xf32> to vector<8x32xbf16>
    %c32 = arith.constant 32 : index
    %c0_27 = arith.constant 0 : index
    %91 = vector.load %arg12[%c32, %c0_27] : memref<64x128xf32, #tpu.memory_space<vmem>>, vector<8x128xf32>
    %cst_28 = arith.constant dense<0.000000e+00> : vector<8x128xf32>
    %92 = tpu.matmul %90, %14, %cst_28 {dimension_numbers = #tpu.dot_dimension_numbers<[1], [0], [0], [1], [0, 0, 1, 1], [], []>} : vector<8x32xbf16>, vector<32x128xbf16>, vector<8x128xf32> -> vector<8x128xf32>
    %93 = arith.addf %91, %92 : vector<8x128xf32>
    %94 = math.tanh %93 : vector<8x128xf32>
    %95 = vector.broadcast %15 : vector<1x128xf32> to vector<8x128xf32>
    %96 = arith.mulf %94, %95 : vector<8x128xf32>
    %97 = vector.broadcast %16 : vector<1x128xf32> to vector<8x128xf32>
    %98 = arith.addf %96, %97 : vector<8x128xf32>
    %99 = vector.extract_strided_slice %98 {offsets = [0, 0], sizes = [8, 32], strides = [1, 1]} : vector<8x128xf32> to vector<8x32xf32>
    %100 = vector.extract_strided_slice %98 {offsets = [0, 32], sizes = [8, 32], strides = [1, 1]} : vector<8x128xf32> to vector<8x32xf32>
    %101 = vector.extract_strided_slice %98 {offsets = [0, 64], sizes = [8, 32], strides = [1, 1]} : vector<8x128xf32> to vector<8x32xf32>
    %102 = vector.extract_strided_slice %98 {offsets = [0, 96], sizes = [8, 32], strides = [1, 1]} : vector<8x128xf32> to vector<8x32xf32>
    %103 = arith.mulf %100, %87 : vector<8x32xf32>
    %104 = arith.mulf %99, %101 : vector<8x32xf32>
    %105 = arith.addf %103, %104 : vector<8x32xf32>
    %106 = math.tanh %105 : vector<8x32xf32>
    %107 = arith.mulf %102, %106 : vector<8x32xf32>
    %108 = arith.truncf %107 : vector<8x32xf32> to vector<8x32xbf16>
    %c40 = arith.constant 40 : index
    %c0_29 = arith.constant 0 : index
    %109 = vector.load %arg12[%c40, %c0_29] : memref<64x128xf32, #tpu.memory_space<vmem>>, vector<8x128xf32>
    %cst_30 = arith.constant dense<0.000000e+00> : vector<8x128xf32>
    %110 = tpu.matmul %108, %14, %cst_30 {dimension_numbers = #tpu.dot_dimension_numbers<[1], [0], [0], [1], [0, 0, 1, 1], [], []>} : vector<8x32xbf16>, vector<32x128xbf16>, vector<8x128xf32> -> vector<8x128xf32>
    %111 = arith.addf %109, %110 : vector<8x128xf32>
    %112 = math.tanh %111 : vector<8x128xf32>
    %113 = vector.broadcast %15 : vector<1x128xf32> to vector<8x128xf32>
    %114 = arith.mulf %112, %113 : vector<8x128xf32>
    %115 = vector.broadcast %16 : vector<1x128xf32> to vector<8x128xf32>
    %116 = arith.addf %114, %115 : vector<8x128xf32>
    %117 = vector.extract_strided_slice %116 {offsets = [0, 0], sizes = [8, 32], strides = [1, 1]} : vector<8x128xf32> to vector<8x32xf32>
    %118 = vector.extract_strided_slice %116 {offsets = [0, 32], sizes = [8, 32], strides = [1, 1]} : vector<8x128xf32> to vector<8x32xf32>
    %119 = vector.extract_strided_slice %116 {offsets = [0, 64], sizes = [8, 32], strides = [1, 1]} : vector<8x128xf32> to vector<8x32xf32>
    %120 = vector.extract_strided_slice %116 {offsets = [0, 96], sizes = [8, 32], strides = [1, 1]} : vector<8x128xf32> to vector<8x32xf32>
    %121 = arith.mulf %118, %105 : vector<8x32xf32>
    %122 = arith.mulf %117, %119 : vector<8x32xf32>
    %123 = arith.addf %121, %122 : vector<8x32xf32>
    %124 = math.tanh %123 : vector<8x32xf32>
    %125 = arith.mulf %120, %124 : vector<8x32xf32>
    %126 = arith.truncf %125 : vector<8x32xf32> to vector<8x32xbf16>
    %c48 = arith.constant 48 : index
    %c0_31 = arith.constant 0 : index
    %127 = vector.load %arg12[%c48, %c0_31] : memref<64x128xf32, #tpu.memory_space<vmem>>, vector<8x128xf32>
    %cst_32 = arith.constant dense<0.000000e+00> : vector<8x128xf32>
    %128 = tpu.matmul %126, %14, %cst_32 {dimension_numbers = #tpu.dot_dimension_numbers<[1], [0], [0], [1], [0, 0, 1, 1], [], []>} : vector<8x32xbf16>, vector<32x128xbf16>, vector<8x128xf32> -> vector<8x128xf32>
    %129 = arith.addf %127, %128 : vector<8x128xf32>
    %130 = math.tanh %129 : vector<8x128xf32>
    %131 = vector.broadcast %15 : vector<1x128xf32> to vector<8x128xf32>
    %132 = arith.mulf %130, %131 : vector<8x128xf32>
    %133 = vector.broadcast %16 : vector<1x128xf32> to vector<8x128xf32>
    %134 = arith.addf %132, %133 : vector<8x128xf32>
    %135 = vector.extract_strided_slice %134 {offsets = [0, 0], sizes = [8, 32], strides = [1, 1]} : vector<8x128xf32> to vector<8x32xf32>
    %136 = vector.extract_strided_slice %134 {offsets = [0, 32], sizes = [8, 32], strides = [1, 1]} : vector<8x128xf32> to vector<8x32xf32>
    %137 = vector.extract_strided_slice %134 {offsets = [0, 64], sizes = [8, 32], strides = [1, 1]} : vector<8x128xf32> to vector<8x32xf32>
    %138 = vector.extract_strided_slice %134 {offsets = [0, 96], sizes = [8, 32], strides = [1, 1]} : vector<8x128xf32> to vector<8x32xf32>
    %139 = arith.mulf %136, %123 : vector<8x32xf32>
    %140 = arith.mulf %135, %137 : vector<8x32xf32>
    %141 = arith.addf %139, %140 : vector<8x32xf32>
    %142 = math.tanh %141 : vector<8x32xf32>
    %143 = arith.mulf %138, %142 : vector<8x32xf32>
    %144 = arith.truncf %143 : vector<8x32xf32> to vector<8x32xbf16>
    %c56 = arith.constant 56 : index
    %c0_33 = arith.constant 0 : index
    %145 = vector.load %arg12[%c56, %c0_33] : memref<64x128xf32, #tpu.memory_space<vmem>>, vector<8x128xf32>
    %cst_34 = arith.constant dense<0.000000e+00> : vector<8x128xf32>
    %146 = tpu.matmul %144, %14, %cst_34 {dimension_numbers = #tpu.dot_dimension_numbers<[1], [0], [0], [1], [0, 0, 1, 1], [], []>} : vector<8x32xbf16>, vector<32x128xbf16>, vector<8x128xf32> -> vector<8x128xf32>
    %147 = arith.addf %145, %146 : vector<8x128xf32>
    %148 = math.tanh %147 : vector<8x128xf32>
    %149 = vector.broadcast %15 : vector<1x128xf32> to vector<8x128xf32>
    %150 = arith.mulf %148, %149 : vector<8x128xf32>
    %151 = vector.broadcast %16 : vector<1x128xf32> to vector<8x128xf32>
    %152 = arith.addf %150, %151 : vector<8x128xf32>
    %153 = vector.extract_strided_slice %152 {offsets = [0, 0], sizes = [8, 32], strides = [1, 1]} : vector<8x128xf32> to vector<8x32xf32>
    %154 = vector.extract_strided_slice %152 {offsets = [0, 32], sizes = [8, 32], strides = [1, 1]} : vector<8x128xf32> to vector<8x32xf32>
    %155 = vector.extract_strided_slice %152 {offsets = [0, 64], sizes = [8, 32], strides = [1, 1]} : vector<8x128xf32> to vector<8x32xf32>
    %156 = vector.extract_strided_slice %152 {offsets = [0, 96], sizes = [8, 32], strides = [1, 1]} : vector<8x128xf32> to vector<8x32xf32>
    %157 = arith.mulf %154, %141 : vector<8x32xf32>
    %158 = arith.mulf %153, %155 : vector<8x32xf32>
    %159 = arith.addf %157, %158 : vector<8x32xf32>
    %160 = math.tanh %159 : vector<8x32xf32>
    %161 = arith.mulf %156, %160 : vector<8x32xf32>
    %c0_35 = arith.constant 0 : index
    %c0_36 = arith.constant 0 : index
    %162 = vector.load %arg7[%c0_35, %c0_36] : memref<32x32xf32, #tpu.memory_space<vmem>>, vector<32x32xf32>
    %cst_37 = arith.constant dense<0.000000e+00> : vector<8x32xf32>
    %163 = tpu.matmul %161, %162, %cst_37 {dimension_numbers = #tpu.dot_dimension_numbers<[1], [0], [0], [1], [0, 0, 1, 1], [], []>} : vector<8x32xf32>, vector<32x32xf32>, vector<8x32xf32> -> vector<8x32xf32>
    %c0_38 = arith.constant 0 : index
    %c0_39 = arith.constant 0 : index
    %164 = vector.load %arg8[%c0_38, %c0_39] : memref<1x32xf32, #tpu.memory_space<vmem>>, vector<1x32xf32>
    %165 = vector.broadcast %164 : vector<1x32xf32> to vector<8x32xf32>
    %166 = arith.addf %163, %165 : vector<8x32xf32>
    %cst_40 = arith.constant 0.000000e+00 : f32
    %167 = vector.broadcast %cst_40 : f32 to vector<8x32xf32>
    %168 = arith.maximumf %166, %167 : vector<8x32xf32>
    %c0_41 = arith.constant 0 : index
    %c0_42 = arith.constant 0 : index
    %169 = vector.load %arg9[%c0_41, %c0_42] : memref<32x128xf32, #tpu.memory_space<vmem>>, vector<32x128xf32>
    %cst_43 = arith.constant dense<0.000000e+00> : vector<8x128xf32>
    %170 = tpu.matmul %168, %169, %cst_43 {dimension_numbers = #tpu.dot_dimension_numbers<[1], [0], [0], [1], [0, 0, 1, 1], [], []>} : vector<8x32xf32>, vector<32x128xf32>, vector<8x128xf32> -> vector<8x128xf32>
    %c0_44 = arith.constant 0 : index
    %c0_45 = arith.constant 0 : index
    %171 = vector.load %arg10[%c0_44, %c0_45] : memref<1x128xf32, #tpu.memory_space<vmem>>, vector<1x128xf32>
    %172 = vector.broadcast %171 : vector<1x128xf32> to vector<8x128xf32>
    %173 = arith.addf %170, %172 : vector<8x128xf32>
    %c0_46 = arith.constant 0 : index
    %c0_47 = arith.constant 0 : index
    %174 = vector.load %arg11[%c0_46, %c0_47] : memref<8x128xf32, #tpu.memory_space<vmem>>, vector<8x128xf32>
    tpu.vector_store %arg11[%c0_46, %c0_47], %173 {strides = array<i32>} : memref<8x128xf32, #tpu.memory_space<vmem>>, vector<8x128xf32>,
    return
  }
}

</mosaic_0001>

<bundles_post_ra>
// kernel: remi_classifier_forward.1
= control target key start
LH: loop header
LB: loop body
LE: loop exit
PB: predicated region body
PF: predicated region fallthrough
CT: control target
= control target key end

     0   :  { %vm58_vm0 = vcmask 261120   ;;  %v1452_v3 = vmov 0   ;;  %v1453_v17 = vmov 0.0   ;;  %vm1454_vm1 = vmmov 0   ;;  %s1455_s12 = smov 64   ;;  %s1456_s13 = smov 32   ;;  %s1793_s2 = inlined_call_operand.vmem [shape: f32[32,128], index: 2, kind: input, shape index: {}]   ;;  %s1794_s1 = inlined_call_operand.vmem [shape: f32[64,32], index: 1, kind: input, shape index: {}]   ;;  %s1795_s0 = inlined_call_operand.vmem [shape: s32[64,1], index: 0, kind: input, shape index: {}]   ;;  %s1796_s4 = inlined_call_operand.vmem [shape: bf16[32,128], index: 4, kind: input, shape index: {}]   ;;  %s1797_s3 = inlined_call_operand.vmem [shape: f32[1,128], index: 3, kind: input, shape index: {}]   ;;  %s1798_s5 = inlined_call_operand.vmem [shape: f32[1,128], index: 5, kind: input, shape index: {}]   ;;  %s1799_s6 = inlined_call_operand.vmem [shape: f32[1,128], index: 6, kind: input, shape index: {}]   ;;  %s1800_s7 = inlined_call_operand.vmem [shape: f32[32,32], index: 7, kind: input, shape index: {}]   ;;  %s1801_s9 = inlined_call_operand.vmem [shape: f32[32,128], index: 9, kind: input, shape index: {}]   ;;  %s1802_s8 = inlined_call_operand.vmem [shape: f32[1,32], index: 8, kind: input, shape index: {}]   ;;  %s1803_s10 = inlined_call_operand.vmem [shape: f32[1,128], index: 10, kind: input, shape index: {}]   ;;  %s1804_s11 = inlined_call_operand.vmem [shape: f32[8,128], index: 11, kind: output, shape index: {}]  }
   0x1   :  { %v47_v0 = vld [vmem:[%s1793_s2] sm:$0xff]  ;;  %v48_v1 = vld [vmem:[%s1793_s2 + $0x8] sm:$0xff]  ;;  %v49_v2 = vld [vmem:[%s1793_s2 + $0x10] sm:$0xff]  ;;  %1416 = vset.pattern.permute.xlu0 %v1452_v3  ;;  %1417 = vset.pattern.permute.xlu1 %v1452_v3  ;;  %v196_v20 = vlaneseq  ;;  %vm246_vm2 = vcmask 523264  }
   0x2   :  { %v1374_v4 = vpack.c.bf16 %v48_v1, %v47_v0  ;;  %v50_v5 = vld [vmem:[%s1793_s2 + $0x18] sm:$0xff]  ;;  %v39_v6 = vld [vmem:[%s1794_s1] sm:$0xff]  ;;  %v189_v9 = vld [vmem:[%s1795_s0 + $0x8] sm:$0xff] }
   0x3   :  { %v1378_v7 = vpack.c.bf16 %v50_v5, %v49_v2  ;;  %1248 = vmatprep.mubr.msk.f32.mxu0 %vm58_vm0, %v39_v6  ;;  %v188_v8 = vld [vmem:[%s1795_s0] sm:$0xff]  ;;  %v40_v10 = vld [vmem:[%s1794_s1 + $0x8] sm:$0xff]  ;;  %v41_v11 = vld [vmem:[%s1794_s1 + $0x10] sm:$0xff]  ;;  %v1591_v21 = vand.u32 127, %v196_v20 }
   0x4   :  { %1375 = vmatprep.subr.bf16.mxu0 %v1374_v4  ;;  %199 = vperm.xlu0 %1416, %v188_v8   ;;  %v42_v12 = vld [vmem:[%s1794_s1 + $0x18] sm:$0xff]  ;;  %v43_v13 = vld [vmem:[%s1794_s1 + $0x20] sm:$0xff]  ;;  %v44_v14 = vld [vmem:[%s1794_s1 + $0x28] sm:$0xff] }
   0x5   :  { %1377 = vmatpush3.bf16.msra.mxu0 %v1374_v4  ;;  %v45_v15 = vld [vmem:[%s1794_s1 + $0x30] sm:$0xff]  ;;  %v46_v16 = vld [vmem:[%s1794_s1 + $0x38] sm:$0xff]  ;;  %v1572_v18 = vld [vmem:[%s1796_s4] sm:$0xff]  }
   0x6   :  { %1379 = vmatprep.subr.bf16.mxu0 %v1378_v7  ;;  %v1579_v19 = vld [vmem:[%s1796_s4 + $0x8] sm:$0xff]   ;;  %v1138_v24 = vld [vmem:[%s1797_s3] ss:$0 sm:$0xff]  ;;  %v194_v20 = vld [vmem:[%s1795_s0 + $0x30] sm:$0xff] }
   0x7   :  { %v1610_v54 = vld [vmem:[%s1798_s5] ss:$0 sm:$0xff] }
   0x8   :  { %202 = vperm.xlu0 %1416, %v189_v9   ;;  %v1615_v56 = vld [vmem:[%s1799_s6] ss:$0 sm:$0xff] }
   0x9   :  { %1381 = vmatpush3.bf16.msra.mxu0 %v1378_v7 }
   0xa   :  { %1288 = vmatprep.subr.bf16.mxu0 %v1453_v17 }
   0xc   :  { %1249 = vmatmul.mubr.msk.f32.vlgmr.msra.gmra.mrb[0].mxu0 %vm58_vm0, %v40_v10 }
   0xd   :  { %1251 = vmatprep.mubr.msk.f32.mxu0 %vm58_vm0, %v41_v11  ;;  %1289 = vmatpush3.bf16.msra.mxu0 %v1572_v18 }
   0xe   :  { %1290 = vmatprep.subr.bf16.mxu0 %v1453_v17 }
  0x10   :  { %1252 = vmatmul.mubr.msk.f32.gmra.mrb[2].mxu0 %vm58_vm0, %v42_v12 }
  0x11   :  { %1254 = vmatprep.mubr.msk.f32.mxu0 %vm58_vm0, %v43_v13  ;;  %1291 = vmatpush3.bf16.msra.mxu0 %v1579_v19 }
  0x12   :  { %1296 = vmatprep.subr.bf16.mxu0 %v1453_v17 }
  0x14   :  { %1255 = vmatmul.mubr.msk.f32.gmra.mrb[4].mxu0 %vm58_vm0, %v44_v14 }
  0x15   :  { %1257 = vmatprep.mubr.msk.f32.mxu0 %vm58_vm0, %v45_v15  ;;  %v190_v15 = vld [vmem:[%s1795_s0 + $0x10] sm:$0xff] }
  0x18   :  { %1258 = vmatmul.mubr.msk.f32.gmra.mrb[6].mxu0 %vm58_vm0, %v46_v16  ;;  %v192_v16 = vld [vmem:[%s1795_s0 + $0x20] sm:$0xff] }
  0x19   :  { %1292 = vmatprep.mubr.msk.bf16.mxu0 %vm1454_vm1, %v1453_v17 }
  0x1c   :  { %1293 = vmatmul.mubr.bf16.vlgmr.msra.gmra.mrb[8].mxu0 %v1452_v3 }
  0x1d   :  { %1297 = vmatpush3.bf16.msra.mxu0 %v1572_v18  ;;  %1300 = vmatprep.mubr.msk.bf16.mxu0 %vm1454_vm1, %v1453_v17 }
  0x1e   :  { %1298 = vmatprep.subr.bf16.mxu0 %v1453_v17 }
  0x21   :  { %1299 = vmatpush3.bf16.msra.mxu0 %v1579_v19 }
  0x22   :  { %1312 = vmatprep.subr.bf16.mxu0 %v1453_v17 }
  0x83   :  { %v200_v22 = vpop.permute.xlu0 %199 }
  0x84   :  { %vm222_vm3 = vcmp.eq.s32.totalorder %v200_v22, %v1591_v21 }
  0x85   :  { %v1147_v23 = vsel %vm222_vm3, 1.0, %v1453_v17 }
  0x86   :  { %1276 = vmatprep.mubr.msk.f32.mxu1 %vm246_vm2, %v1147_v23 }
  0x87   :  { %v203_v44 = vpop.permute.xlu0 %202 }
  0x88   :  { %vm223_vm4 = vcmp.eq.s32.totalorder %v203_v44, %v1591_v21 }
  0x89   :  { %v1148_v46 = vsel %vm223_vm4, 1.0, %v1453_v17 }
  0xdf   :  { %v1250_v25 = vpop.f32.mrb[0].mxu0 }
  0xe0   :  { %v155_v26 = vadd.f32 %v1250_v25, %v1138_v24  ;;  %v149_v27 = vpop.f32.mrb[1].mxu0 }
  0xe1   :  { %v150_v28 = vadd.f32 %v1138_v24, %v149_v27 }
  0xe3   :  { %v1253_v29 = vpop.f32.mrb[2].mxu0  ;;  %v1382_v30 = vpack.c.bf16 %v155_v26, %v150_v28  ;;  %v191_v26 = vld [vmem:[%s1795_s0 + $0x18] sm:$0xff]  ;;  %v193_v28 = vld [vmem:[%s1795_s0 + $0x28] sm:$0xff] }
  0xe4   :  { %v165_v31 = vadd.f32 %v1253_v29, %v1138_v24  ;;  %v159_v32 = vpop.f32.mrb[3].mxu0 }
  0xe5   :  { %v160_v33 = vadd.f32 %v1138_v24, %v159_v32  ;;  %1383 = vmatprep.subr.bf16.mxu1 %v1382_v30 }
  0xe6   :  { %1385 = vmatpush3.bf16.msra.mxu1 %v1382_v30  ;;  %v195_v30 = vld [vmem:[%s1795_s0 + $0x38] sm:$0xff] }
  0xe7   :  { %v1386_v34 = vpack.c.bf16 %v165_v31, %v160_v33  ;;  %v1256_v35 = vpop.f32.mrb[4].mxu0 }
  0xe8   :  { %v175_v36 = vadd.f32 %v1256_v35, %v1138_v24  ;;  %v169_v37 = vpop.f32.mrb[5].mxu0 }
  0xe9   :  { %v170_v38 = vadd.f32 %v1138_v24, %v169_v37  ;;  %1387 = vmatprep.subr.bf16.mxu1 %v1386_v34 }
  0xea   :  { %1389 = vmatpush3.bf16.msra.mxu1 %v1386_v34 }
  0xeb   :  { %v1390_v39 = vpack.c.bf16 %v175_v36, %v170_v38  ;;  %v1259_v40 = vpop.f32.mrb[6].mxu0 }
  0xec   :  { %v185_v41 = vadd.f32 %v1259_v40, %v1138_v24  ;;  %v179_v42 = vpop.f32.mrb[7].mxu0 }
  0xed   :  { %v180_v43 = vadd.f32 %v1138_v24, %v179_v42  ;;  %1391 = vmatprep.subr.bf16.mxu1 %v1390_v39 }
  0xee   :  { %1393 = vmatpush3.bf16.msra.mxu1 %v1390_v39 }
  0xef   :  { %v1394_v45 = vpack.c.bf16 %v185_v41, %v180_v43  ;;  %v440_v47 = vpop.f32.mrb[8].mxu0 }
  0xf0   :  { %v1294_v48 = vpop.f32.mrb[9].mxu0 }
  0xf1   :  { %1395 = vmatprep.subr.bf16.mxu1 %v1394_v45  ;;  %v443_v49 = vpop.f32.mrb[10].mxu0 }
  0xf2   :  { %1397 = vmatpush3.bf16.msra.mxu1 %v1394_v45  ;;  %v1295_v50 = vpop.f32.mrb[11].mxu0 }
  0xf3   :  { %1304 = vmatprep.subr.bf16.mxu1 %v1453_v17 }
  0xf5   :  { %1277 = vmatmul.mubr.msk.f32.vlgmr.msra.gmra.mrb[0].mxu1 %vm246_vm2, %v1148_v46 }
  0xf6   :  { %1305 = vmatpush3.bf16.msra.mxu1 %v1572_v18 }
  0xf7   :  { %1306 = vmatprep.subr.bf16.mxu1 %v1453_v17 }
  0xfa   :  { %1307 = vmatpush3.bf16.msra.mxu1 %v1579_v19 }
  0xfb   :  { %1320 = vmatprep.subr.bf16.mxu1 %v1453_v17 }
 0x1c8   :  { %v1278_v51 = vpop.f32.mrb[0].mxu1 }
 0x1c9   :  { %v337_v52 = vpop.f32.mrb[1].mxu1 }
 0x1ca   :  { %v446_v53 = vadd.f32 %v440_v47, %v337_v52 }
 0x1cc   :  { %1420 = vtanh.f32 %v446_v53 }
 0x1d6   :  { %v1421_v55 = vpop.eup %1420 }
 0x1d7   :  { %v454_v57 = vmul.f32 %v1421_v55, %v1610_v54 }
 0x1d9   :  { %v461_v58 = vadd.f32 %v1615_v56, %v454_v57 }
 0x1db   :  { %464 = vrot.lane.b32.xlu1 %v461_v58, %s1455_s12  ;;  %v462_v61 = vmul.f32 0.0, %v461_v58 }
 0x24d   :  { %v465_v59 = vpop.permute.xlu1 %464 }
 0x24e   :  { %v467_v60 = vmul.f32 %v465_v59, %v461_v58 }
 0x250   :  { %469 = vrot.lane.b32.xlu1 %v467_v60, %s1456_s13 }
 0x2c2   :  { %v470_v62 = vpop.permute.xlu1 %469 }
 0x2c3   :  { %v472_v63 = vadd.f32 %v470_v62, %v462_v61 }
 0x2c5   :  { %1422 = vtanh.f32 %v472_v63 }
 0x2cf   :  { %v1423_v0 = vpop.eup %1422 }
 0x2d0   :  { %475 = vrot.lane.b32.xlu0 %v1423_v0, %s1455_s12 }
 0x342   :  { %v476_v1 = vpop.permute.xlu0 %475 }
 0x343   :  { %v478_v2 = vmul.f32 %v476_v1, %v461_v58 }
 0x345   :  { %v479_v3 = vpack.c.bf16 %v478_v2, %v478_v2 }
 0x347   :  { %482 = vrot.lane.b32.xlu1 %v479_v3, %s1456_s13 }
 0x3b9   :  { %v483_v4 = vpop.permute.xlu1 %482 }
 0x3ba   :  { %1301 = vmatmul.mubr.msk.bf16.vlgmr.msra.gmra.mrb[12].mxu0 %vm58_vm0, %v483_v4 }
 0x3bb   :  { %1313 = vmatpush3.bf16.msra.mxu0 %v1572_v18  ;;  %1316 = vmatprep.mubr.msk.bf16.mxu0 %vm1454_vm1, %v1453_v17 }
 0x3bc   :  { %1314 = vmatprep.subr.bf16.mxu0 %v1453_v17 }
 0x3bf   :  { %1315 = vmatpush3.bf16.msra.mxu0 %v1579_v19 }
 0x3c0   :  { %1328 = vmatprep.subr.bf16.mxu0 %v1453_v17 }
 0x48d   :  { %v521_v5 = vpop.f32.mrb[12].mxu0 }
 0x48e   :  { %v527_v6 = vadd.f32 %v1278_v51, %v521_v5  ;;  %v1302_v7 = vpop.f32.mrb[13].mxu0 }
 0x48f   :  { %v524_v8 = vpop.f32.mrb[14].mxu0 }
 0x490   :  { %1424 = vtanh.f32 %v527_v6  ;;  %v1303_v9 = vpop.f32.mrb[15].mxu0 }
 0x49a   :  { %v1425_v10 = vpop.eup %1424 }
 0x49b   :  { %v529_v11 = vmul.f32 %v1425_v10, %v1610_v54 }
 0x49d   :  { %v530_v12 = vadd.f32 %v1615_v56, %v529_v11 }
 0x49f   :  { %533 = vrot.lane.b32.xlu0 %v530_v12, %s1455_s12  ;;  %v531_v22 = vmul.f32 %v530_v12, %v472_v63 }
 0x511   :  { %v534_v13 = vpop.permute.xlu0 %533 }
 0x512   :  { %v536_v14 = vmul.f32 %v534_v13, %v530_v12 }
 0x514   :  { %538 = vrot.lane.b32.xlu1 %v536_v14, %s1456_s13 }
 0x518   :  { %205 = vperm.xlu1 %1417, %v190_v15  }
 0x51c   :  { %211 = vperm.xlu1 %1417, %v192_v16  }
 0x520   :  { %217 = vperm.xlu1 %1417, %v194_v20  }
 0x586   :  { %v539_v23 = vpop.permute.xlu1 %538 }
 0x587   :  { %v1643_v24 = vadd.f32 %v539_v23, %v531_v22 }
 0x589   :  { %1426 = vtanh.f32 %v1643_v24 }
 0x593   :  { %v1427_v25 = vpop.eup %1426 }
 0x594   :  { %544 = vrot.lane.b32.xlu0 %v1427_v25, %s1455_s12 }
 0x597   :  { %v206_v27 = vpop.permute.xlu1 %205 }
 0x598   :  { %208 = vperm.xlu0 %1416, %v191_v26   ;;  %vm224_vm5 = vcmp.eq.s32.totalorder %v206_v27, %v1591_v21 }
 0x599   :  { %v1149_v29 = vsel %vm224_vm5, 1.0, %v1453_v17 }
 0x59a   :  { %1279 = vmatprep.mubr.msk.f32.mxu1 %vm246_vm2, %v1149_v29 }
 0x59b   :  { %v212_v34 = vpop.permute.xlu1 %211 }
 0x59c   :  { %214 = vperm.xlu0 %1416, %v193_v28   ;;  %vm226_vm6 = vcmp.eq.s32.totalorder %v212_v34, %v1591_v21 }
 0x59d   :  { %v1151_v37 = vsel %vm226_vm6, 1.0, %v1453_v17 }
 0x59f   :  { %v218_v35 = vpop.permute.xlu1 %217 }
 0x5a0   :  { %220 = vperm.xlu0 %1416, %v195_v30   ;;  %vm228_vm8 = vcmp.eq.s32.totalorder %v218_v35, %v1591_v21 }
 0x5a1   :  { %v1153_v40 = vsel %vm228_vm8, 1.0, %v1453_v17 }
 0x606   :  { %v545_v31 = vpop.permute.xlu0 %544 }
 0x607   :  { %v547_v32 = vmul.f32 %v545_v31, %v530_v12 }
 0x609   :  { %v548_v33 = vpack.c.bf16 %v547_v32, %v547_v32 }
 0x60b   :  { %551 = vrot.lane.b32.xlu1 %v548_v33, %s1456_s13 }
 0x617   :  { %v209_v36 = vpop.permute.xlu0 %208 }
 0x618   :  { %vm225_vm7 = vcmp.eq.s32.totalorder %v209_v36, %v1591_v21 }
 0x619   :  { %v1150_v38 = vsel %vm225_vm7, 1.0, %v1453_v17 }
 0x61a   :  { %1280 = vmatmul.mubr.msk.f32.gmra.mrb[2].mxu1 %vm246_vm2, %v1150_v38 }
 0x61b   :  { %v215_v39 = vpop.permute.xlu0 %214  ;;  %1282 = vmatprep.mubr.msk.f32.mxu1 %vm246_vm2, %v1151_v37 }
 0x61c   :  { %vm227_vm9 = vcmp.eq.s32.totalorder %v215_v39, %v1591_v21 }
 0x61d   :  { %v1152_v41 = vsel %vm227_vm9, 1.0, %v1453_v17 }
 0x61e   :  { %1283 = vmatmul.mubr.msk.f32.gmra.mrb[4].mxu1 %vm246_vm2, %v1152_v41 }
 0x61f   :  { %v221_v42 = vpop.permute.xlu0 %220  ;;  %1285 = vmatprep.mubr.msk.f32.mxu1 %vm246_vm2, %v1153_v40 }
 0x620   :  { %vm229_vm10 = vcmp.eq.s32.totalorder %v221_v42, %v1591_v21 }
 0x621   :  { %v1154_v43 = vsel %vm229_vm10, 1.0, %v1453_v17 }
 0x622   :  { %1286 = vmatmul.mubr.msk.f32.gmra.mrb[6].mxu1 %vm246_vm2, %v1154_v43 }
 0x623   :  { %1308 = vmatprep.mubr.msk.bf16.mxu1 %vm1454_vm1, %v1453_v17 }
 0x67d   :  { %v552_v44 = vpop.permute.xlu1 %551 }
 0x67e   :  { %1309 = vmatmul.mubr.msk.bf16.vlgmr.msra.gmra.mrb[8].mxu1 %vm58_vm0, %v552_v44 }
 0x67f   :  { %1321 = vmatpush3.bf16.msra.mxu1 %v1572_v18  ;;  %1324 = vmatprep.mubr.msk.bf16.mxu1 %vm1454_vm1, %v1453_v17 }
 0x680   :  { %1322 = vmatprep.subr.bf16.mxu1 %v1453_v17 }
 0x683   :  { %1323 = vmatpush3.bf16.msra.mxu1 %v1579_v19 }
 0x684   :  { %1336 = vmatprep.subr.bf16.mxu1 %v1453_v17 }
 0x6ed   :  { %v1281_v21 = vpop.f32.mrb[2].mxu1 }
 0x6ee   :  { %v347_v45 = vpop.f32.mrb[3].mxu1 }
 0x6f1   :  { %v1684_v46 = vpop.f32.mrb[4].mxu1 }
 0x6f2   :  { %v1686_v47 = vpop.f32.mrb[5].mxu1 }
 0x6f5   :  { %v1688_v48 = vpop.f32.mrb[6].mxu1 }
 0x6f6   :  { %v1690_v49 = vpop.f32.mrb[7].mxu1 }
 0x751   :  { %v590_v50 = vpop.f32.mrb[8].mxu1 }
 0x752   :  { %v596_v51 = vadd.f32 %v590_v50, %v347_v45  ;;  %v1310_v52 = vpop.f32.mrb[9].mxu1 }
 0x753   :  { %v593_v53 = vpop.f32.mrb[10].mxu1 }
 0x754   :  { %1428 = vtanh.f32 %v596_v51  ;;  %v1311_v55 = vpop.f32.mrb[11].mxu1 }
 0x75e   :  { %v1429_v57 = vpop.eup %1428 }
 0x75f   :  { %v598_v58 = vmul.f32 %v1429_v57, %v1610_v54 }
 0x761   :  { %v599_v59 = vadd.f32 %v1615_v56, %v598_v58 }
 0x763   :  { %602 = vrot.lane.b32.xlu0 %v599_v59, %s1455_s12  ;;  %v600_v62 = vmul.f32 %v599_v59, %v1643_v24 }
 0x7d5   :  { %v603_v60 = vpop.permute.xlu0 %602 }
 0x7d6   :  { %v605_v61 = vmul.f32 %v603_v60, %v599_v59 }
 0x7d8   :  { %607 = vrot.lane.b32.xlu1 %v605_v61, %s1456_s13 }
 0x84a   :  { %v608_v63 = vpop.permute.xlu1 %607 }
 0x84b   :  { %v610_v0 = vadd.f32 %v608_v63, %v600_v62 }
 0x84d   :  { %1430 = vtanh.f32 %v610_v0 }
 0x857   :  { %v1431_v1 = vpop.eup %1430 }
 0x858   :  { %613 = vrot.lane.b32.xlu0 %v1431_v1, %s1455_s12 }
 0x8ca   :  { %v614_v2 = vpop.permute.xlu0 %613 }
 0x8cb   :  { %v616_v3 = vmul.f32 %v614_v2, %v599_v59 }
 0x8cd   :  { %v617_v4 = vpack.c.bf16 %v616_v3, %v616_v3 }
 0x8cf   :  { %620 = vrot.lane.b32.xlu1 %v617_v4, %s1456_s13 }
 0x941   :  { %v621_v5 = vpop.permute.xlu1 %620 }
 0x942   :  { %1317 = vmatmul.mubr.msk.bf16.vlgmr.msra.gmra.mrb[16].mxu0 %vm58_vm0, %v621_v5 }
 0x943   :  { %1329 = vmatpush3.bf16.msra.mxu0 %v1572_v18  ;;  %1332 = vmatprep.mubr.msk.bf16.mxu0 %vm1454_vm1, %v1453_v17 }
 0x944   :  { %1330 = vmatprep.subr.bf16.mxu0 %v1453_v17 }
 0x947   :  { %1331 = vmatpush3.bf16.msra.mxu0 %v1579_v19 }
 0x948   :  { %1344 = vmatprep.subr.bf16.mxu0 %v1453_v17 }
 0xa15   :  { %v659_v6 = vpop.f32.mrb[16].mxu0 }
 0xa16   :  { %v665_v7 = vadd.f32 %v1281_v21, %v659_v6  ;;  %v1318_v8 = vpop.f32.mrb[17].mxu0 }
 0xa17   :  { %v662_v9 = vpop.f32.mrb[18].mxu0 }
 0xa18   :  { %1432 = vtanh.f32 %v665_v7  ;;  %v1319_v10 = vpop.f32.mrb[19].mxu0 }
 0xa22   :  { %v1433_v11 = vpop.eup %1432 }
 0xa23   :  { %v667_v12 = vmul.f32 %v1433_v11, %v1610_v54 }
 0xa25   :  { %v668_v13 = vadd.f32 %v1615_v56, %v667_v12 }
 0xa27   :  { %671 = vrot.lane.b32.xlu0 %v668_v13, %s1455_s12  ;;  %v669_v16 = vmul.f32 %v668_v13, %v610_v0 }
 0xa99   :  { %v672_v14 = vpop.permute.xlu0 %671 }
 0xa9a   :  { %v674_v15 = vmul.f32 %v672_v14, %v668_v13 }
 0xa9c   :  { %676 = vrot.lane.b32.xlu1 %v674_v15, %s1456_s13 }
 0xb0e   :  { %v677_v20 = vpop.permute.xlu1 %676 }
 0xb0f   :  { %v679_v22 = vadd.f32 %v677_v20, %v669_v16 }
 0xb11   :  { %1434 = vtanh.f32 %v679_v22 }
 0xb1b   :  { %v1435_v23 = vpop.eup %1434 }
 0xb1c   :  { %682 = vrot.lane.b32.xlu0 %v1435_v23, %s1455_s12 }
 0xb8e   :  { %v683_v24 = vpop.permute.xlu0 %682 }
 0xb8f   :  { %v685_v25 = vmul.f32 %v683_v24, %v668_v13 }
 0xb91   :  { %v686_v26 = vpack.c.bf16 %v685_v25, %v685_v25 }
 0xb93   :  { %689 = vrot.lane.b32.xlu1 %v686_v26, %s1456_s13 }
 0xc05   :  { %v690_v27 = vpop.permute.xlu1 %689 }
 0xc06   :  { %1325 = vmatmul.mubr.msk.bf16.vlgmr.msra.gmra.mrb[12].mxu1 %vm58_vm0, %v690_v27 }
 0xc07   :  { %1337 = vmatpush3.bf16.msra.mxu1 %v1572_v18  ;;  %1340 = vmatprep.mubr.msk.bf16.mxu1 %vm1454_vm1, %v1453_v17 }
 0xc08   :  { %1338 = vmatprep.subr.bf16.mxu1 %v1453_v17 }
 0xc0b   :  { %1339 = vmatpush3.bf16.msra.mxu1 %v1579_v19 }
 0xcd9   :  { %v728_v28 = vpop.f32.mrb[12].mxu1 }
 0xcda   :  { %v734_v29 = vadd.f32 %v728_v28, %v1686_v47  ;;  %v1326_v30 = vpop.f32.mrb[13].mxu1 }
 0xcdb   :  { %v731_v31 = vpop.f32.mrb[14].mxu1 }
 0xcdc   :  { %1436 = vtanh.f32 %v734_v29  ;;  %v1327_v32 = vpop.f32.mrb[15].mxu1 }
 0xce6   :  { %v1437_v33 = vpop.eup %1436 }
 0xce7   :  { %v736_v34 = vmul.f32 %v1437_v33, %v1610_v54 }
 0xce9   :  { %v737_v35 = vadd.f32 %v1615_v56, %v736_v34  ;;  %v962_v34 = vld [vmem:[%s1800_s7] sm:$0xff] }
 0xceb   :  { %740 = vrot.lane.b32.xlu0 %v737_v35, %s1455_s12  ;;  %v738_v38 = vmul.f32 %v737_v35, %v679_v22 }
 0xd5d   :  { %v741_v36 = vpop.permute.xlu0 %740 }
 0xd5e   :  { %v743_v37 = vmul.f32 %v741_v36, %v737_v35  ;;  %v965_v36 = vld [vmem:[%s1800_s7 + $0x18] sm:$0xff] }
 0xd60   :  { %745 = vrot.lane.b32.xlu1 %v743_v37, %s1456_s13 }
 0xdd2   :  { %v746_v39 = vpop.permute.xlu1 %745 }
 0xdd3   :  { %v748_v40 = vadd.f32 %v746_v39, %v738_v38  ;;  %v1049_v39 = vld [vmem:[%s1801_s9] sm:$0xff] }
 0xdd5   :  { %1438 = vtanh.f32 %v748_v40 }
 0xddf   :  { %v1439_v41 = vpop.eup %1438 }
 0xde0   :  { %751 = vrot.lane.b32.xlu0 %v1439_v41, %s1455_s12 }
 0xe52   :  { %v752_v42 = vpop.permute.xlu0 %751 }
 0xe53   :  { %v754_v43 = vmul.f32 %v752_v42, %v737_v35 }
 0xe55   :  { %v755_v44 = vpack.c.bf16 %v754_v43, %v754_v43 }
 0xe57   :  { %758 = vrot.lane.b32.xlu1 %v755_v44, %s1456_s13 }
 0xec9   :  { %v759_v21 = vpop.permute.xlu1 %758 }
 0xeca   :  { %1333 = vmatmul.mubr.msk.bf16.vlgmr.msra.gmra.mrb[20].mxu0 %vm58_vm0, %v759_v21  ;;  %v1051_v21 = vld [vmem:[%s1801_s9 + $0x10] sm:$0xff] }
 0xecb   :  { %1345 = vmatpush3.bf16.msra.mxu0 %v1572_v18  ;;  %1348 = vmatprep.mubr.msk.bf16.mxu0 %vm1454_vm1, %v1453_v17 }
 0xecc   :  { %1346 = vmatprep.subr.bf16.mxu0 %v1453_v17 }
 0xecf   :  { %1347 = vmatpush3.bf16.msra.mxu0 %v1579_v19 }
 0xf9d   :  { %v797_v45 = vpop.f32.mrb[20].mxu0 }
 0xf9e   :  { %v803_v47 = vadd.f32 %v1684_v46, %v797_v45  ;;  %v1334_v50 = vpop.f32.mrb[21].mxu0  ;;  %v1052_v45 = vld [vmem:[%s1801_s9 + $0x18] sm:$0xff] }
 0xf9f   :  { %v800_v51 = vpop.f32.mrb[22].mxu0  ;;  %v1174_v50 = vld [vmem:[%s1802_s8] ss:$0 sm:$0xff] }
 0xfa0   :  { %1440 = vtanh.f32 %v803_v47  ;;  %v1335_v52 = vpop.f32.mrb[23].mxu0  ;;  %v1408_v47 = vpack.c.bf16 %v1052_v45, %v1051_v21 }
 0xfaa   :  { %v1441_v53 = vpop.eup %1440 }
 0xfab   :  { %v805_v55 = vmul.f32 %v1441_v53, %v1610_v54 }
 0xfad   :  { %v806_v57 = vadd.f32 %v1615_v56, %v805_v55 }
 0xfaf   :  { %809 = vrot.lane.b32.xlu0 %v806_v57, %s1455_s12  ;;  %v807_v59 = vmul.f32 %v806_v57, %v748_v40  ;;  %v1050_v40 = vld [vmem:[%s1801_s9 + $0x8] sm:$0xff] }
 0xfb0   :  { %v1405_v41 = vpack.c.bf16 %v1050_v40, %v1049_v39 }
0x1021   :  { %v810_v18 = vpop.permute.xlu0 %809 }
0x1022   :  { %v812_v58 = vmul.f32 %v810_v18, %v806_v57 }
0x1024   :  { %814 = vrot.lane.b32.xlu1 %v812_v58, %s1456_s13 }
0x1096   :  { %v815_v19 = vpop.permute.xlu1 %814 }
0x1097   :  { %v817_v60 = vadd.f32 %v815_v19, %v807_v59 }
0x1099   :  { %1442 = vtanh.f32 %v817_v60 }
0x10a3   :  { %v1443_v46 = vpop.eup %1442 }
0x10a4   :  { %820 = vrot.lane.b32.xlu0 %v1443_v46, %s1455_s12 }
0x1116   :  { %v821_v61 = vpop.permute.xlu0 %820 }
0x1117   :  { %v823_v62 = vmul.f32 %v821_v61, %v806_v57  ;;  %v1176_v57 = vld [vmem:[%s1803_s10] ss:$0 sm:$0xff] }
0x1119   :  { %v824_v63 = vpack.c.bf16 %v823_v62, %v823_v62 }
0x111b   :  { %827 = vrot.lane.b32.xlu1 %v824_v63, %s1456_s13 }
0x118d   :  { %v828_v0 = vpop.permute.xlu1 %827 }
0x118e   :  { %1341 = vmatmul.mubr.msk.bf16.vlgmr.msra.gmra.mrb[16].mxu1 %vm58_vm0, %v828_v0 }
0x118f   :  { %1360 = vmatprep.mubr.msk.f32.mxu1 %vm1454_vm1, %v1453_v17 }
0x1261   :  { %v866_v1 = vpop.f32.mrb[16].mxu1 }
0x1262   :  { %v872_v2 = vadd.f32 %v866_v1, %v1690_v49  ;;  %v1342_v3 = vpop.f32.mrb[17].mxu1 }
0x1263   :  { %v869_v4 = vpop.f32.mrb[18].mxu1 }
0x1264   :  { %1444 = vtanh.f32 %v872_v2  ;;  %v1343_v5 = vpop.f32.mrb[19].mxu1 }
0x126e   :  { %v1445_v6 = vpop.eup %1444 }
0x126f   :  { %v874_v7 = vmul.f32 %v1445_v6, %v1610_v54 }
0x1271   :  { %v875_v8 = vadd.f32 %v1615_v56, %v874_v7 }
0x1273   :  { %878 = vrot.lane.b32.xlu0 %v875_v8, %s1455_s12  ;;  %v876_v11 = vmul.f32 %v875_v8, %v817_v60 }
0x12e5   :  { %v879_v9 = vpop.permute.xlu0 %878 }
0x12e6   :  { %v881_v10 = vmul.f32 %v879_v9, %v875_v8 }
0x12e8   :  { %883 = vrot.lane.b32.xlu1 %v881_v10, %s1456_s13 }
0x135a   :  { %v884_v12 = vpop.permute.xlu1 %883 }
0x135b   :  { %v886_v13 = vadd.f32 %v884_v12, %v876_v11 }
0x135d   :  { %1446 = vtanh.f32 %v886_v13 }
0x1367   :  { %v1447_v49 = vpop.eup %1446 }
0x1368   :  { %889 = vrot.lane.b32.xlu0 %v1447_v49, %s1455_s12 }
0x13da   :  { %v890_v14 = vpop.permute.xlu0 %889 }
0x13db   :  { %v892_v15 = vmul.f32 %v890_v14, %v875_v8 }
0x13dd   :  { %v893_v16 = vpack.c.bf16 %v892_v15, %v892_v15 }
0x13df   :  { %896 = vrot.lane.b32.xlu1 %v893_v16, %s1456_s13 }
0x1451   :  { %v897_v20 = vpop.permute.xlu1 %896 }
0x1452   :  { %1349 = vmatmul.mubr.msk.bf16.vlgmr.msra.gmra.mrb[24].mxu0 %vm58_vm0, %v897_v20 }
0x1453   :  { %1371 = vmatprep.mubr.msk.f32.mxu0 %vm1454_vm1, %v1453_v17 }
0x1525   :  { %v935_v22 = vpop.f32.mrb[24].mxu0 }
0x1526   :  { %v941_v23 = vadd.f32 %v1688_v48, %v935_v22  ;;  %v1350_v24 = vpop.f32.mrb[25].mxu0  ;;  %v1457_v48 = vmov 0.0|0.0  }
0x1527   :  { %v938_v25 = vpop.f32.mrb[26].mxu0  ;;  %1398 = vmatprep.subr.bf16.mxu1 %v1457_v48  ;;  %1404 = vmatprep.subr.bf16.mxu0 %v1457_v48 }
0x1528   :  { %1448 = vtanh.f32 %v941_v23  ;;  %v1351_v26 = vpop.f32.mrb[27].mxu0  ;;  %1406 = vmatpush3.bf16.msra.mxu0 %v1405_v41 }
0x1529   :  { %1407 = vmatprep.subr.bf16.mxu0 %v1457_v48 }
0x152c   :  { %1409 = vmatpush3.bf16.msra.mxu0 %v1408_v47 }
0x1532   :  { %v1449_v27 = vpop.eup %1448 }
0x1533   :  { %v943_v28 = vmul.f32 %v1449_v27, %v1610_v54  ;;  %v963_v54 = vld [vmem:[%s1800_s7 + $0x8] sm:$0xff] }
0x1534   :  { %v1399_v35 = vpack.c.bf16 %v963_v54, %v962_v34 }
0x1535   :  { %v944_v29 = vadd.f32 %v1615_v56, %v943_v28  ;;  %v964_v56 = vld [vmem:[%s1800_s7 + $0x10] sm:$0xff] }
0x1536   :  { %1400 = vmatpush3.bf16.msra.mxu1 %v1399_v35  ;;  %v1402_v37 = vpack.c.bf16 %v965_v36, %v964_v56 }
0x1537   :  { %947 = vrot.lane.b32.xlu0 %v944_v29, %s1455_s12  ;;  %v945_v32 = vmul.f32 %v944_v29, %v886_v13  ;;  %1401 = vmatprep.subr.bf16.mxu1 %v1457_v48 }
0x153a   :  { %1403 = vmatpush3.bf16.msra.mxu1 %v1402_v37 }
0x15a9   :  { %v948_v30 = vpop.permute.xlu0 %947 }
0x15aa   :  { %v950_v31 = vmul.f32 %v948_v30, %v944_v29 }
0x15ac   :  { %952 = vrot.lane.b32.xlu1 %v950_v31, %s1456_s13 }
0x161e   :  { %v953_v17 = vpop.permute.xlu1 %952 }
0x161f   :  { %v955_v33 = vadd.f32 %v953_v17, %v945_v32 }
0x1621   :  { %1450 = vtanh.f32 %v955_v33 }
0x162b   :  { %v1451_v38 = vpop.eup %1450 }
0x162c   :  { %958 = vrot.lane.b32.xlu0 %v1451_v38, %s1455_s12 }
0x169e   :  { %v959_v42 = vpop.permute.xlu0 %958 }
0x169f   :  { %v961_v43 = vmul.f32 %v959_v42, %v944_v29 }
0x16a1   :  { %974 = vrot.lane.b32.xlu1 %v961_v43, %s1456_s13 }
0x1713   :  { %v975_v44 = vpop.permute.xlu1 %974 }
0x1714   :  { %1361 = vmatmul.mubr.msk.f32.vlgmr.msra.gmra.mrb[20].mxu1 %vm58_vm0, %v975_v44 }
0x17e7   :  { %v1044_v51 = vpop.f32.mrb[20].mxu1 }
0x17e8   :  { %v1045_v52 = vadd.f32 %v1174_v50, %v1044_v51  ;;  %v1362_v53 = vpop.f32.mrb[21].mxu1 }
0x17ea   :  { %v1048_v55 = vmax.f32 %v1045_v52, 0.0 }
0x17ec   :  { %1372 = vmatmul.mubr.msk.f32.vlgmr.msra.gmra.mrb[28].mxu0 %vm58_vm0, %v1048_v55 }
0x18bf   :  { %v1129_v18 = vpop.f32.mrb[28].mxu0 }
0x18c0   :  { %v1130_v58 = vadd.f32 %v1176_v57, %v1129_v18  ;;  %v1373_v59 = vpop.f32.mrb[29].mxu0 }
0x18c2   :  { %1133 = vst [vmem:[%s1804_s11] sm:$0xff] %v1130_v58 }

</bundles_post_ra>
